<compile_context>
chip_gen: v7x
topology: tpu7x:2x2x1
jax: 0.10.0
libtpu: 0.0.40
codegen_flags: <defaults>
</compile_context>

<pallas_src>
import jax
import jax.numpy as jnp
from jax.experimental import pallas as pl
from jax.experimental.pallas import tpu as pltpu

# RoBERTa special-token ids (deterministic constants, mimicking the tokenizer)
PAD_TOKEN_ID = 1
MASK_TOKEN_ID = 50264
BOS_TOKEN_ID = 0
EOS_TOKEN_ID = 2
VOCAB_SIZE = 50265

_ROW_ALIGN = 32           # batch-tile multiple of 32 -> legal int8 output tiles
_SMALL_ELEMS = 64 * 1024  # below this, launch/DMA setup dwarfs the data moved


def _round_up(x, m):
    return ((x + m - 1) // m) * m


def _prompt_kernel(ids_ref, masks_ref, pos_ref):
    """attention mask + first-<mask>-token position for a (TB, S) tile."""
    ids = ids_ref[...]                                          # [TB, S] int32
    seq_len = ids.shape[1]

    # attention_mask: 1 where not padding, 0 where padding
    masks_ref[...] = (ids != PAD_TOKEN_ID).astype(masks_ref.dtype)

    # masked_pos: FIRST position of the <mask> token per row
    # (== (input_ids == mask_token_id).nonzero()[0]).  Rows with no mask token
    # yield the sentinel `seq_len`; the reference module always emits exactly
    # one <mask> per row, so the sentinel never escapes in practice.
    is_mask = ids == MASK_TOKEN_ID                              # [TB, S] bool
    col = jax.lax.broadcasted_iota(jnp.int32, ids.shape, 1)     # [TB, S]
    pos_ref[...] = jnp.min(
        jnp.where(is_mask, col, seq_len), axis=1, keepdims=True)  # [TB, 1]


def _prompt_jax(ids, mask_dtype):
    """Pure-JAX fallback for tiny batches (launch overhead > work)."""
    S = ids.shape[1]
    masks = (ids != PAD_TOKEN_ID).astype(mask_dtype)
    col = jnp.arange(S, dtype=jnp.int32)[None, :]
    pos = jnp.min(jnp.where(ids == MASK_TOKEN_ID, col, S), axis=1,
                  keepdims=True).astype(jnp.int32)
    return masks, pos


def prompt_forward(ids, mlm_tokens, *, block_rows=4096, mask_dtype=jnp.int8,
                   use_pallas=None):
    """JAX/Pallas equivalent of prompt.forward after tokenization.

    Args:
      ids:        [B, S] int32 token ids (already "tokenized" + padded).
      mlm_tokens: [B, 1] int32 label token ids (first token of each prompt).
      block_rows: batch-tile size (rounded up to a multiple of 32).
      mask_dtype: dtype of the attention mask output.  int8 (default) halves
                  total HBM bytes on this bandwidth-bound op; pass jnp.int32
                  for exact parity with the PyTorch attention_mask dtype class.
      use_pallas: force (True) / skip (False) the Pallas path; None = auto
                  (skip for tiny inputs where launch overhead dominates).

    Returns:
      (ids, masks, mlm_tokens, mlm_pos) matching the PyTorch return tuple.
      `ids` is returned as-is (no redundant HBM copy through the kernel).
    """
    B, S = ids.shape
    if use_pallas is None:
        use_pallas = (B * S) >= _SMALL_ELEMS
    if not use_pallas:
        masks, pos = _prompt_jax(ids, mask_dtype)
        return ids, masks, mlm_tokens, pos

    # Batch tile: multiple of 32 (int8 output tiling), capped at block_rows.
    # tb=4096, S=128: ids 2 MiB + int8 mask 0.5 MiB per buffer, ~5 MiB total
    # double-buffered -- far under the scoped VMEM limit on v5e/v6e/v7x.
    tb = _round_up(min(block_rows, B), _ROW_ALIGN)
    grid = (pl.cdiv(B, tb),)

    # Partial trailing block: ids reads past B are garbage but affect only
    # rows that are never written back (out_shape is exactly (B, S)/(B, 1)).
    masks, pos = pl.pallas_call(
        _prompt_kernel,
        out_shape=(
            jax.ShapeDtypeStruct((B, S), mask_dtype),
            jax.ShapeDtypeStruct((B, 1), jnp.int32),
        ),
        grid=grid,
        in_specs=[pl.BlockSpec((tb, S), lambda i: (i, 0))],
        out_specs=(
            pl.BlockSpec((tb, S), lambda i: (i, 0)),
            pl.BlockSpec((tb, 1), lambda i: (i, 0)),
        ),
        compiler_params=pltpu.CompilerParams(
            dimension_semantics=("parallel",)),
    )(ids)

    return ids, masks, mlm_tokens, pos


def build_synthetic_batch(key, batch=2, max_length=128):
    """Deterministically build fake 'tokenized' sequences.

    Each row: <s> tok tok ... <mask> . </s> <pad> ... <pad>
    """
    k_len, k_tok, k_lbl = jax.random.split(key, 3)
    seq_lens = jax.random.randint(k_len, (batch,), 10, 30)        # content len
    body = jax.random.randint(k_tok, (batch, max_length), 4, 1000)

    pos = jnp.arange(max_length)[None, :]                         # [1, S]
    L = seq_lens[:, None]                                         # [B, 1]

    ids = jnp.where(pos < L, body, PAD_TOKEN_ID)                  # body tokens
    ids = jnp.where(pos == 0, BOS_TOKEN_ID, ids)                  # <s>
    ids = jnp.where(pos == L, MASK_TOKEN_ID, ids)                 # <mask>
    ids = jnp.where(pos == L + 1, EOS_TOKEN_ID, ids)              # </s>
    ids = ids.astype(jnp.int32)

    # first token id of each prompt string ("label" token)
    mlm_tokens = jax.random.randint(
        k_lbl, (batch, 1), 4, VOCAB_SIZE).astype(jnp.int32)
    return ids, mlm_tokens, seq_lens


if __name__ == "__main__":
    key = jax.random.PRNGKey(0)
    B, S = 2, 128
    ids, mlm_tokens, seq_lens = build_synthetic_batch(key, batch=B, max_length=S)

    # Force the Pallas path so the kernel itself is exercised even at demo size.
    out_ids, masks, out_mlm_tokens, mlm_pos = prompt_forward(
        ids, mlm_tokens, use_pallas=True)
    jax.block_until_ready((out_ids, masks, out_mlm_tokens, mlm_pos))

    # lightweight sanity checks against the pure-JAX reference
    ref_masks = (ids != PAD_TOKEN_ID).astype(masks.dtype)
    col = jnp.arange(S, dtype=jnp.int32)[None, :]
    ref_pos = jnp.min(jnp.where(ids == MASK_TOKEN_ID, col, S), axis=1,
                      keepdims=True).astype(jnp.int32)
    assert out_ids.shape == (B, S) and masks.shape == (B, S)
    assert mlm_pos.shape == (B, 1) and out_mlm_tokens.shape == (B, 1)
    assert bool(jnp.all(out_ids == ids))
    assert bool(jnp.all(masks == ref_masks))
    assert bool(jnp.all(mlm_pos == ref_pos))
    assert bool(jnp.all(mlm_pos[:, 0] == seq_lens))
    assert bool(jnp.all(out_mlm_tokens == mlm_tokens))

    # also exercise the tiny-batch pure-JAX fallback for consistency
    _, masks2, _, pos2 = prompt_forward(ids, mlm_tokens, use_pallas=False)
    assert bool(jnp.all(masks2 == ref_masks)) and bool(jnp.all(pos2 == ref_pos))

    print("KERNEL_OK")
</pallas_src>

<mosaic_0001>
module attributes {stable_mosaic.version = 11 : i64} {
  func.func @_prompt_kernel(%arg0: i32, %arg1: memref<32x128xi32, #tpu.memory_space<vmem>>, %arg2: memref<32x128xi8, #tpu.memory_space<vmem>>, %arg3: memref<32x1xi32, #tpu.memory_space<vmem>>) attributes {dimension_semantics = [#tpu.dimension_semantics<parallel>], iteration_bounds = array<i64: 1>, scalar_prefetch = 0 : i64, scratch_operands = 0 : i64, tpu.core_type = #tpu.core_type<tc>, window_params = [{transform_indices = @transform_0, window_bounds = array<i64: 32, 128>}, {transform_indices = @transform_1, window_bounds = array<i64: 32, 128>}, {transform_indices = @transform_2, window_bounds = array<i64: 32, 1>}]} {
    %c0 = arith.constant 0 : index
    %c0_0 = arith.constant 0 : index
    %0 = vector.load %arg1[%c0, %c0_0] : memref<32x128xi32, #tpu.memory_space<vmem>>, vector<32x128xi32>
    %c1_i32 = arith.constant 1 : i32
    %1 = vector.broadcast %c1_i32 : i32 to vector<32x128xi32>
    %2 = arith.cmpi ne, %0, %1 : vector<32x128xi32>
    %3 = arith.extui %2 : vector<32x128xi1> to vector<32x128xi8>
    %c0_1 = arith.constant 0 : index
    %c0_2 = arith.constant 0 : index
    %4 = vector.load %arg2[%c0_1, %c0_2] : memref<32x128xi8, #tpu.memory_space<vmem>>, vector<32x128xi8>
    tpu.vector_store %arg2[%c0_1, %c0_2], %3 {strides = array<i32>} : memref<32x128xi8, #tpu.memory_space<vmem>>, vector<32x128xi8>,
    %c50264_i32 = arith.constant 50264 : i32
    %5 = vector.broadcast %c50264_i32 : i32 to vector<32x128xi32>
    %6 = arith.cmpi eq, %0, %5 : vector<32x128xi32>
    %7 = tpu.iota {dimensions = array<i32: 1>} : vector<32x128xi32>
    %c128_i32 = arith.constant 128 : i32
    %8 = vector.broadcast %c128_i32 : i32 to vector<32x128xi32>
    %9 = arith.select %6, %7, %8 : vector<32x128xi1>, vector<32x128xi32>
    %cst = arith.constant dense<2147483647> : vector<32xi32>
    %10 = vector.multi_reduction <minsi>, %9, %cst [1] : vector<32x128xi32> to vector<32xi32>
    %11 = vector.shape_cast %10 : vector<32xi32> to vector<32x1xi32>
    %c0_3 = arith.constant 0 : index
    %c0_4 = arith.constant 0 : index
    %12 = vector.load %arg3[%c0_3, %c0_4] : memref<32x1xi32, #tpu.memory_space<vmem>>, vector<32x1xi32>
    tpu.vector_store %arg3[%c0_3, %c0_4], %11 {strides = array<i32>} : memref<32x1xi32, #tpu.memory_space<vmem>>, vector<32x1xi32>,
    return
  }
  func.func @transform_0(%arg0: i32) -> (i32, i32) {
    %c0_i32 = arith.constant 0 : i32
    %c0_i32_0 = arith.constant 0 : i32
    return %arg0, %c0_i32 : i32, i32
  }
  func.func @transform_1(%arg0: i32) -> (i32, i32) {
    %c0_i32 = arith.constant 0 : i32
    %c0_i32_0 = arith.constant 0 : i32
    return %arg0, %c0_i32 : i32, i32
  }
  func.func @transform_2(%arg0: i32) -> (i32, i32) {
    %c0_i32 = arith.constant 0 : i32
    %c0_i32_0 = arith.constant 0 : i32
    return %arg0, %c0_i32 : i32, i32
  }
}

</mosaic_0001>

<bundles_post_ra>
// kernel: tpu_custom_call.1
= control target key start
LH: loop header
LB: loop body
LE: loop exit
PB: predicated region body
PF: predicated region fallthrough
CT: control target
= control target key end

     0   :  { %8 = vsyncpa [#allocation3], 0  ;;  %s333_s0 = inlined_call_operand.hbm [shape: s32[2,128], index: 0, kind: input, shape index: {}]   ;;  %s334_s1 = inlined_call_operand.hbm [shape: s8[2,128], index: 1, kind: output, shape index: {0}]   ;;  %s335_s2 = inlined_call_operand.vmem [shape: s32[2,1], index: 2, kind: output, shape index: {1}]  }
   0x1   :  { %9 = vsyncpa [#allocation4], 0 }
   0x2   :  { %14 = vsyncadd [#allocation3], 480  ;;  %s283_s9 = smov [#allocation2]   ;;  %s235_s13 = scalar_lea.hbm %s333_s0, 32 }
   0x3   :  { %s15_s10 = sshll.u32 %s283_s9, 4  ;;  %p236_p0 = scmp.ne.s32.totalorder %s333_s0, %s235_s13  ;;  %s16_s10 = int_to_ptr.vmem [resolvable:$true] %s15_s10 }
   0x4   :  { %p239_p1 = scmp.lt.u32.totalorder %s235_s13, %s333_s0 }
   0x6   :  { %p241_p2 = pnand %p239_p1, %p236_p0 }
   0x8   :  { %244 = shalt.err (!%p241_p2)
}
   0x9   :  { %s245_s18 = scalar_lea.vmem %s16_s10, 32  ;;  %s249_s19 = scalar_lea.vmem %s16_s10, 512 }
   0xa   :  { %p246_p3 = scmp.ne.s32.totalorder %s16_s10, %s245_s18  ;;  %p250_p4 = scmp.lt.s32.totalorder %s16_s10, %s16_s10 }
   0xb   :  { %p251_p5 = scmp.lt.s32.totalorder %s249_s19, %s245_s18 }
   0xd   :  { %p252_p6 = por %p251_p5, %p250_p4 }
   0xf   :  { %p253_p7 = pnand %p252_p6, %p246_p3 }
  0x11   :  { %256 = shalt.err (!%p253_p7)
}
  0x12   :  { %s284_s20 = smov 32   ;;  %s285_s21 = smov 2  }
  0x13   :  { %21 = dma.hbm_to_vmem [thread:$0]  %s333_s0, 32, %s16_s10, [#allocation3], %s284_s20, %s284_s20, %s285_s21  }
  0x14   :  { %279 = dma.done.wait [#allocation3], 512  }
  0x15   :  { %280 = vsyncadd [#allocation3], 4294966784  ;;  %v286_v0 = vmov 1966171168   ;;  %v43_v2 = vlaneseq  ;;  %v27_v6 = vld [vmem:[#allocation2] sm:$0xff]  ;;  %v29_v8 = vld [vmem:[#allocation2 + $0x10] sm:$0xff] }
  0x16   :  { %v41_v1 = vunpack.c.l.s4 %v286_v0  ;;  %v28_v9 = vld [vmem:[#allocation2 + $0x8] sm:$0xff]  ;;  %vm96_vm0 = vcmp.eq.s32.totalorder %v27_v6, 50264  ;;  %vm31_vm1 = vcmp.ne.s32.totalorder %v27_v6, 1  ;;  %vm98_vm2 = vcmp.eq.s32.totalorder %v29_v8, 50264  ;;  %v30_v10 = vld [vmem:[#allocation2 + $0x18] sm:$0xff] }
  0x17   :  { %v44_v4 = vshrl.u32 %v43_v2, 7  ;;  %v101_v5 = vand.u32 127, %v43_v2  ;;  %vm33_vm3 = vcmp.ne.s32.totalorder %v29_v8, 1  ;;  %vm32_vm4 = vcmp.ne.s32.totalorder %v28_v9, 1 }
  0x18   :  { %v42_v3 = vunpack.c.0.s8 %v41_v1  ;;  %vm97_vm5 = vcmp.eq.s32.totalorder %v28_v9, 50264  ;;  %vm35_vm6 = vmpackc.low %vm32_vm4, %vm31_vm1  ;;  %vm34_vm7 = vcmp.ne.s32.totalorder %v30_v10, 1  ;;  %vm99_vm8 = vcmp.eq.s32.totalorder %v30_v10, 50264 }
  0x19   :  { %v102_v11 = vsel %vm96_vm0, %v101_v5, 128  ;;  %v104_v12 = vsel %vm98_vm2, %v101_v5, 128  ;;  %v103_v15 = vsel %vm97_vm5, %v101_v5, 128  ;;  %vm36_vm9 = vmpackc.low %vm34_vm7, %vm33_vm3  ;;  %v105_v19 = vsel %vm99_vm8, %v101_v5, 128 }
  0x1a   :  { %v45_v7 = vsub.s32 %v42_v3, %v44_v4  ;;  %v107_v13 = vshra.s32 %v102_v11, 16  ;;  %v135_v14 = vshra.s32 %v104_v12, 16  ;;  %v121_v16 = vshra.s32 %v103_v15, 16  ;;  %vm37_vm10 = vmpackc.even %vm36_vm9, %vm35_vm6 }
  0x1b   :  { %v149_v20 = vshra.s32 %v105_v19, 16  ;;  %v287_v21 = vmov 0   ;;  %v106_v38 = vand.u32 65535, %v102_v11  ;;  %v134_v39 = vand.u32 65535, %v104_v12 }
  0x1c   :  { %v109_v17 = vcvt.s32.f32 %v107_v13  ;;  %v137_v18 = vcvt.s32.f32 %v135_v14  ;;  %v38_v22 = vsel %vm37_vm10, 16843009, %v287_v21  ;;  %v123_v23 = vcvt.s32.f32 %v121_v16 }
  0x1d   :  { %v39_v24 = vcombine.high %v38_v22, %v38_v22  ;;  %v46_v25 = vrot.slane %v38_v22, %v45_v7  ;;  %v151_v26 = vcvt.s32.f32 %v149_v20  ;;  %v108_v40 = vcvt.s32.f32 %v106_v38 }
  0x1e   :  { %110 = vmin.xlane.f32.xlu0 %v109_v17  ;;  %138 = vmin.xlane.f32.xlu1 %v137_v18  ;;  %v120_v41 = vand.u32 65535, %v103_v15  ;;  %v136_v44 = vcvt.s32.f32 %v134_v39  ;;  %v148_v45 = vand.u32 65535, %v105_v19  ;;  %vm162_vm15 = vcmask 7168  }
  0x1f   :  { %v53_v27 = vrot.slane %v39_v24, %v45_v7  ;;  %v54_v28 = vcombine.high %v46_v25, %v46_v25  ;;  %v62_v29 = vrot.slane %v46_v25, %v45_v7  ;;  %223 = vst.sshfl [vmem:[#allocation5] sm:$0x1 pattern:$0x73625140] %v46_v25 }
  0x20   :  { %v122_v47 = vcvt.s32.f32 %v120_v41  ;;  %v150_v51 = vcvt.s32.f32 %v148_v45 }
  0x21   :  { %v55_v30 = vcombine.high %v53_v27, %v53_v27  ;;  %v69_v31 = vrot.slane %v53_v27, %v45_v7  ;;  %v76_v32 = vrot.slane %v54_v28, %v45_v7  ;;  %224 = vst.sshfl [vmem:[#allocation5 + $0x1] sm:$0x1 pattern:$0x73625140] %v54_v28  ;;  %v84_v33 = vcombine.high %v62_v29, %v62_v29 }
  0x22   :  { %124 = vmin.xlane.f32.xlu0 %v123_v23  ;;  %152 = vmin.xlane.f32.xlu1 %v151_v26  ;;  %225 = vst.sshfl [vmem:[#allocation5 + $0x4] sm:$0x1 pattern:$0x73625140] %v53_v27 }
  0x23   :  { %v83_v34 = vrot.slane %v55_v30, %v45_v7  ;;  %v85_v35 = vcombine.high %v69_v31, %v69_v31  ;;  %v86_v36 = vcombine.high %v76_v32, %v76_v32  ;;  %226 = vst.sshfl [vmem:[#allocation5 + $0x5] sm:$0x1 pattern:$0x73625140] %v55_v30  ;;  %90 = vst [vmem:[#allocation5 + $0x2] sm:$0x1] %v84_v33 }
  0x25   :  { %v87_v37 = vcombine.high %v83_v34, %v83_v34  ;;  %91 = vst [vmem:[#allocation5 + $0x3] sm:$0x1] %v86_v36  ;;  %94 = vst [vmem:[#allocation5 + $0x6] sm:$0x1] %v85_v35 }
  0x27   :  { %95 = vst [vmem:[#allocation5 + $0x7] sm:$0x1] %v87_v37 }
  0xab   :  { %v111_v42 = vpop.xlane.xlu0 %110  ;;  %v139_v43 = vpop.xlane.xlu1 %138 }
  0xac   :  { %vm112_vm11 = vcmp.eq.f32.partialorder %v109_v17, %v111_v42  ;;  %vm140_vm12 = vcmp.eq.f32.partialorder %v137_v18, %v139_v43  ;;  %v117_v54 = vcvt.f32.s32 %v111_v42 }
  0xad   :  { %v113_v46 = vsel %vm112_vm11, %v108_v40, inf  ;;  %v141_v49 = vsel %vm140_vm12, %v136_v44, inf }
  0xae   :  { %114 = vmin.xlane.f32.xlu0 %v113_v46  ;;  %v118_v56 = vshll.u32 %v117_v54, 16 }
  0xaf   :  { %v125_v48 = vpop.xlane.xlu0 %124  ;;  %v153_v50 = vpop.xlane.xlu1 %152 }
  0xb0   :  { %vm126_vm13 = vcmp.eq.f32.partialorder %v123_v23, %v125_v48  ;;  %vm154_vm14 = vcmp.eq.f32.partialorder %v151_v26, %v153_v50 }
  0xb1   :  { %v127_v52 = vsel %vm126_vm13, %v122_v47, inf  ;;  %v155_v53 = vsel %vm154_vm14, %v150_v51, inf }
  0xb2   :  { %128 = vmin.xlane.f32.xlu1 %v127_v52  ;;  %142 = vmin.xlane.f32.xlu0 %v141_v49 }
  0xb6   :  { %156 = vmin.xlane.f32.xlu1 %v155_v53 }
 0x13b   :  { %v115_v55 = vpop.xlane.xlu0 %114 }
 0x13c   :  { %v116_v57 = vcvt.f32.s32 %v115_v55 }
 0x13e   :  { %v119_v58 = vadd.s32 %v118_v56, %v116_v57 }
 0x13f   :  { %v129_v59 = vpop.xlane.xlu1 %128  ;;  %v143_v60 = vpop.xlane.xlu0 %142 }
 0x140   :  { %163 = vst.msk [vmem:[#allocation6] sm:$0xff] %vm162_vm15, %v119_v58 }
 0x143   :  { %v157_v61 = vpop.xlane.xlu1 %156 }
 0x144   :  { %171 = vsyncadd [#allocation4], 112  ;;  %s288_s0 = smov [#allocation5]  }
 0x145   :  { %s172_s24 = sshll.u32 %s288_s0, 4  ;;  %s173_s24 = int_to_ptr.vmem [resolvable:$true] %s172_s24 }
 0x146   :  { %s257_s27 = scalar_lea.vmem %s173_s24, 16  ;;  %s261_s28 = scalar_lea.vmem %s173_s24, 128 }
 0x147   :  { %v196_v62 = vld [vmem:[#allocation6] sm:$0x3]  ;;  %p258_p8 = scmp.ne.s32.totalorder %s173_s24, %s257_s27  ;;  %p262_p9 = scmp.lt.s32.totalorder %s173_s24, %s173_s24 }
 0x148   :  { %197 = vst [vmem:[%s335_s2] sm:$0x3] %v196_v62  ;;  %p263_p10 = scmp.lt.s32.totalorder %s261_s28, %s257_s27 }
 0x14a   :  { %p264_p11 = por %p263_p10, %p262_p9 }
 0x14c   :  { %p265_p12 = pnand %p264_p11, %p258_p8 }
 0x14e   :  { %268 = shalt.err (!%p265_p12)
}
 0x14f   :  { %s269_s3 = scalar_lea.hbm %s334_s1, 16 }
 0x150   :  { %p270_p13 = scmp.ne.s32.totalorder %s334_s1, %s269_s3  ;;  %p273_p0 = scmp.lt.u32.totalorder %s269_s3, %s334_s1 }
 0x152   :  { %p275_p1 = pnand %p273_p0, %p270_p13 }
 0x154   :  { %278 = shalt.err (!%p275_p1)
}
 0x155   :  { %s289_s2 = smov 16   ;;  %s290_s8 = smov 1  }
 0x156   :  { %178 = dma.vmem_to_hbm [thread:$0]  %s173_s24, 16, %s334_s1, [#allocation4], %s289_s2, %s289_s2, %s290_s8  }
 0x157   :  { %281 = dma.done.wait [#allocation4], 128  }
 0x158   :  { %282 = vsyncadd [#allocation4], 4294967168 }
 0x159   :  { %217 = vsyncpa [#allocation3], 1 }
 0x15a   :  { %218 = vsyncpa [#allocation4], 1 }

</bundles_post_ra>
